<compile_context>
chip_gen: v6e
topology: v6e:2x2x1
jax: 0.10.0
libtpu: 0.0.40
codegen_flags: <defaults>
</compile_context>

<pallas_src>
import sys

import jax
import jax.numpy as jnp
from jax import lax
from jax.experimental import pallas as pl
from jax.experimental.pallas import tpu as pltpu

EPS = sys.float_info.epsilon  # matches the torch script's `eps`

_LANE = 128
_SUBLANE = 8


def _round_up(v, m):
    return (v + m - 1) // m * m


def _round_down(v, m):
    return v // m * m


def _vmem_capacity_bytes():
    try:
        return int(pltpu.get_tpu_info().vmem_capacity_bytes)
    except Exception:
        return 64 * 1024 * 1024  # v7x-safe fallback


def disc_loss(x, *, block_budget_bytes=None):
    """Pallas implementation of DiscLoss.forward. Returns a float32 scalar."""
    x = jnp.asarray(x)
    n = x.shape[0]
    assert n >= 2, "unbiased variance over dim 0 needs at least 2 samples"
    f = 1
    for s in x.shape[1:]:
        f *= s

    x2 = x.reshape(n, f)                      # free view; native dtype kept
    itemsize = jnp.dtype(x2.dtype).itemsize

    # ---- per-chip VMEM budgets -------------------------------------------
    vmem_cap = _vmem_capacity_bytes()
    vmem_limit = _round_down(vmem_cap * 3 // 4, 1024)   # ~96 MiB on 128 MiB parts, ~48 MiB on v7x
    budget = block_budget_bytes if block_budget_bytes is not None else vmem_cap // 2

    # Per-element VMEM cost of an input block: double-buffered native input
    # plus up to two f32 block temporaries inside the kernel.
    per_elem = 2 * itemsize + 2 * 4
    # Per-lane cost independent of tn: double-buffered f32 output block plus
    # the two f32 scratch accumulators.
    per_lane = 4 * 4

    # ---- tile selection ---------------------------------------------------
    if n * (_LANE * per_elem + per_lane) <= budget:
        # Whole batch fits in one block; spend the rest of the budget on lanes.
        tn = n
        n_tiles = 1
        tf_cap = max(_LANE, _round_down(budget // (n * per_elem + per_lane), _LANE))
        tf = f if tf_cap >= f else tf_cap
    else:
        # Very large batch: tile N too (rows are a multiple of the sublane 8).
        tf = min(_round_up(f, _LANE), 2048)   # keep DMA rows reasonably long
        tf = max(_LANE, min(tf, _round_down((budget // per_elem) // _SUBLANE, _LANE)))
        if tf >= f:
            tf = f
        tn = max(_SUBLANE,
                 _round_down((budget - tf * per_lane) // (tf * per_elem), _SUBLANE))
        tn = min(tn, _round_up(n, _SUBLANE))
        n_tiles = pl.cdiv(n, tn)

    f_tiles = pl.cdiv(f, tf)

    # v7x megacore: the "parallel" F axis is the only cross-TensorCore split,
    # so give it >= 2 steps when F is big enough to be worth splitting.
    # (Costs one extra ~0.35 us grid step on single-core v5e/v6e — negligible.)
    if f_tiles == 1 and n_tiles == 1 and f >= 2 * _SUBLANE * _LANE:
        tf = _round_up(pl.cdiv(f, 2), _LANE)
        f_tiles = pl.cdiv(f, tf)

    mask_lanes = (f % tf) != 0          # ragged F edge -> mask tail lanes
    mask_rows = (n % tn) != 0           # ragged N edge -> mask tail rows

    inv_n = 1.0 / n
    inv_nm1 = 1.0 / (n - 1)

    def kernel(x_ref, var_ref, sx_ref, sxx_ref):
        k = pl.program_id(1)

        @pl.when(k == 0)
        def _():
            sx_ref[...] = jnp.zeros_like(sx_ref)
            sxx_ref[...] = jnp.zeros_like(sxx_ref)

        xb = x_ref[...].astype(jnp.float32)       # (tn, tf), cast in-vreg

        # Zero out-of-range lanes / rows: the padded part of a boundary block
        # holds unspecified data; zeros contribute nothing to the sums and the
        # variance formula below uses the true n / f.
        if mask_lanes:
            lane = pl.program_id(0) * tf + lax.broadcasted_iota(jnp.int32, xb.shape, 1)
            xb = jnp.where(lane < f, xb, 0.0)
        if mask_rows:
            row = k * tn + lax.broadcasted_iota(jnp.int32, xb.shape, 0)
            xb = jnp.where(row < n, xb, 0.0)

        # TODO(synk): on v7x with bf16 inputs the two reductions could be moved
        # to the MXU (ones-row jnp.dot) if a bundle dump shows VALU saturating.
        sx_ref[...] += jnp.sum(xb, axis=0, keepdims=True)
        sxx_ref[...] += jnp.sum(xb * xb, axis=0, keepdims=True)

        @pl.when(k == pl.num_programs(1) - 1)
        def _():
            sx = sx_ref[...]
            var_ref[...] = (sxx_ref[...] - sx * sx * jnp.float32(inv_n)) * jnp.float32(inv_nm1)

    per_lane_var = pl.pallas_call(
        kernel,
        out_shape=jax.ShapeDtypeStruct((1, f), jnp.float32),
        grid_spec=pltpu.PrefetchScalarGridSpec(
            num_scalar_prefetch=0,
            grid=(f_tiles, n_tiles),                 # reduction (N) axis last
            in_specs=[pl.BlockSpec((tn, tf), lambda j, k: (k, j))],
            out_specs=pl.BlockSpec((1, tf), lambda j, k: (0, j)),
            scratch_shapes=[pltpu.VMEM((1, tf), jnp.float32),
                            pltpu.VMEM((1, tf), jnp.float32)],
        ),
        compiler_params=pltpu.CompilerParams(
            dimension_semantics=("parallel", "arbitrary"),
            vmem_limit_bytes=int(vmem_limit),
        ),
    )(x2)

    # Tiny epilogue on the lane-dense partials (negligible cost).
    v = jnp.sum(per_lane_var) * jnp.float32(1.0 / f)
    return jnp.log(jnp.float32(1.0) + jnp.float32(n) / (v + jnp.float32(EPS)))


def _reference(x):
    x = jnp.asarray(x, jnp.float32)
    n = x.shape[0]
    var = jnp.var(x, axis=0, ddof=1).mean()
    return jnp.log(1.0 + n / (var + jnp.float32(EPS)))


if __name__ == "__main__":
    key = jax.random.PRNGKey(0)

    # Main demo shape (f32, single full-batch block).
    x = jax.random.normal(key, (2, 4, 16, 16), dtype=jnp.float32)
    loss = jax.block_until_ready(disc_loss(x))
    ref = _reference(x)
    assert jnp.allclose(loss, ref, rtol=1e-5, atol=1e-5), (loss, ref)

    # bf16 input with F not a multiple of 128 (in-kernel cast, full-dim tiles,
    # no padding anywhere).
    xb = jax.random.normal(jax.random.PRNGKey(1), (4, 3, 10, 7), dtype=jnp.bfloat16)
    loss2 = jax.block_until_ready(disc_loss(xb))
    ref2 = _reference(xb)
    assert jnp.allclose(loss2, ref2, rtol=1e-5, atol=1e-5), (loss2, ref2)

    # Forced-tiny block budget: exercises the N-tiled accumulator path and the
    # ragged row/lane masks (grid (3, 3)) without needing a huge input.
    xc = jax.random.normal(jax.random.PRNGKey(2), (20, 3, 9, 13), dtype=jnp.float32)
    loss3 = jax.block_until_ready(disc_loss(xc, block_budget_bytes=16 * 1024))
    ref3 = _reference(xc)
    assert jnp.allclose(loss3, ref3, rtol=1e-5, atol=1e-5), (loss3, ref3)

    print("KERNEL_OK")
</pallas_src>

<mosaic_0001>
module attributes {stable_mosaic.version = 11 : i64} {
  func.func @kernel(%arg0: i32, %arg1: i32, %arg2: memref<2x1024xf32, #tpu.memory_space<vmem>>, %arg3: memref<1x1024xf32, #tpu.memory_space<vmem>>, %arg4: memref<1x1024xf32, #tpu.memory_space<vmem>>, %arg5: memref<1x1024xf32, #tpu.memory_space<vmem>>) attributes {dimension_semantics = [#tpu.dimension_semantics<parallel>, #tpu.dimension_semantics<arbitrary>], iteration_bounds = array<i64: 1, 1>, scalar_prefetch = 0 : i64, scratch_operands = 2 : i64, tpu.core_type = #tpu.core_type<tc>, window_params = [{transform_indices = @transform_0, window_bounds = array<i64: 2, 1024>}, {transform_indices = @transform_1, window_bounds = array<i64: 1, 1024>}]} {
    %c0_i32 = arith.constant 0 : i32
    %0 = arith.cmpi eq, %arg1, %c0_i32 : i32
    %1 = arith.extui %0 : i1 to i32
    %c0_i32_0 = arith.constant 0 : i32
    %2 = arith.cmpi ne, %1, %c0_i32_0 : i32
    scf.if %2 {
      %cst_13 = arith.constant 0.000000e+00 : f32
      %18 = vector.broadcast %cst_13 : f32 to vector<1x1024xf32>
      %c0_14 = arith.constant 0 : index
      %c0_15 = arith.constant 0 : index
      %19 = vector.load %arg4[%c0_14, %c0_15] : memref<1x1024xf32, #tpu.memory_space<vmem>>, vector<1x1024xf32>
      tpu.vector_store %arg4[%c0_14, %c0_15], %18 {strides = array<i32>} : memref<1x1024xf32, #tpu.memory_space<vmem>>, vector<1x1024xf32>,
      %cst_16 = arith.constant 0.000000e+00 : f32
      %20 = vector.broadcast %cst_16 : f32 to vector<1x1024xf32>
      %c0_17 = arith.constant 0 : index
      %c0_18 = arith.constant 0 : index
      %21 = vector.load %arg5[%c0_17, %c0_18] : memref<1x1024xf32, #tpu.memory_space<vmem>>, vector<1x1024xf32>
      tpu.vector_store %arg5[%c0_17, %c0_18], %20 {strides = array<i32>} : memref<1x1024xf32, #tpu.memory_space<vmem>>, vector<1x1024xf32>,
    } else {
    }
    %c0 = arith.constant 0 : index
    %c0_1 = arith.constant 0 : index
    %3 = vector.load %arg2[%c0, %c0_1] : memref<2x1024xf32, #tpu.memory_space<vmem>>, vector<2x1024xf32>
    %c0_2 = arith.constant 0 : index
    %c0_3 = arith.constant 0 : index
    %4 = vector.load %arg4[%c0_2, %c0_3] : memref<1x1024xf32, #tpu.memory_space<vmem>>, vector<1x1024xf32>
    %cst = arith.constant dense<0.000000e+00> : vector<1024xf32>
    %5 = vector.multi_reduction <add>, %3, %cst [0] : vector<2x1024xf32> to vector<1024xf32>
    %6 = vector.shape_cast %5 : vector<1024xf32> to vector<1x1024xf32>
    %7 = arith.addf %4, %6 : vector<1x1024xf32>
    %c0_4 = arith.constant 0 : index
    %c0_5 = arith.constant 0 : index
    %8 = vector.load %arg4[%c0_4, %c0_5] : memref<1x1024xf32, #tpu.memory_space<vmem>>, vector<1x1024xf32>
    tpu.vector_store %arg4[%c0_4, %c0_5], %7 {strides = array<i32>} : memref<1x1024xf32, #tpu.memory_space<vmem>>, vector<1x1024xf32>,
    %c0_6 = arith.constant 0 : index
    %c0_7 = arith.constant 0 : index
    %9 = vector.load %arg5[%c0_6, %c0_7] : memref<1x1024xf32, #tpu.memory_space<vmem>>, vector<1x1024xf32>
    %10 = arith.mulf %3, %3 : vector<2x1024xf32>
    %cst_8 = arith.constant dense<0.000000e+00> : vector<1024xf32>
    %11 = vector.multi_reduction <add>, %10, %cst_8 [0] : vector<2x1024xf32> to vector<1024xf32>
    %12 = vector.shape_cast %11 : vector<1024xf32> to vector<1x1024xf32>
    %13 = arith.addf %9, %12 : vector<1x1024xf32>
    %c0_9 = arith.constant 0 : index
    %c0_10 = arith.constant 0 : index
    %14 = vector.load %arg5[%c0_9, %c0_10] : memref<1x1024xf32, #tpu.memory_space<vmem>>, vector<1x1024xf32>
    tpu.vector_store %arg5[%c0_9, %c0_10], %13 {strides = array<i32>} : memref<1x1024xf32, #tpu.memory_space<vmem>>, vector<1x1024xf32>,
    %c0_i32_11 = arith.constant 0 : i32
    %15 = arith.cmpi eq, %arg1, %c0_i32_11 : i32
    %16 = arith.extui %15 : i1 to i32
    %c0_i32_12 = arith.constant 0 : i32
    %17 = arith.cmpi ne, %16, %c0_i32_12 : i32
    scf.if %17 {
      %c0_13 = arith.constant 0 : index
      %c0_14 = arith.constant 0 : index
      %18 = vector.load %arg4[%c0_13, %c0_14] : memref<1x1024xf32, #tpu.memory_space<vmem>>, vector<1x1024xf32>
      %c0_15 = arith.constant 0 : index
      %c0_16 = arith.constant 0 : index
      %19 = vector.load %arg5[%c0_15, %c0_16] : memref<1x1024xf32, #tpu.memory_space<vmem>>, vector<1x1024xf32>
      %20 = arith.mulf %18, %18 : vector<1x1024xf32>
      %cst_17 = arith.constant 5.000000e-01 : f32
      %21 = vector.broadcast %cst_17 : f32 to vector<1x1024xf32>
      %22 = arith.mulf %20, %21 : vector<1x1024xf32>
      %23 = arith.subf %19, %22 : vector<1x1024xf32>
      %cst_18 = arith.constant 1.000000e+00 : f32
      %24 = vector.broadcast %cst_18 : f32 to vector<1x1024xf32>
      %25 = arith.mulf %23, %24 : vector<1x1024xf32>
      %c0_19 = arith.constant 0 : index
      %c0_20 = arith.constant 0 : index
      %26 = vector.load %arg3[%c0_19, %c0_20] : memref<1x1024xf32, #tpu.memory_space<vmem>>, vector<1x1024xf32>
      tpu.vector_store %arg3[%c0_19, %c0_20], %25 {strides = array<i32>} : memref<1x1024xf32, #tpu.memory_space<vmem>>, vector<1x1024xf32>,
    } else {
    }
    return
  }
  func.func @transform_0(%arg0: i32, %arg1: i32) -> (i32, i32) {
    %c0_i32 = arith.constant 0 : i32
    return %arg1, %arg0 : i32, i32
  }
  func.func @transform_1(%arg0: i32, %arg1: i32) -> (i32, i32) {
    %c0_i32 = arith.constant 0 : i32
    %c0_i32_0 = arith.constant 0 : i32
    return %c0_i32, %arg0 : i32, i32
  }
}

</mosaic_0001>

<bundles_post_ra>
// kernel: tpu_custom_call.1
= control target key start
LH: loop header
LB: loop body
LE: loop exit
PB: predicated region body
PF: predicated region fallthrough
CT: control target
= control target key end

     0   :  { %6 = vsyncpa [#allocation5], 0  ;;  %s507_s0 = inlined_call_operand.hbm [shape: f32[2,1024], index: 0, kind: input, shape index: {}]   ;;  %s508_s1 = inlined_call_operand.hbm [shape: f32[1,1024], index: 1, kind: output, shape index: {}]  }
   0x1   :  { %7 = vsyncpa [#allocation6], 0  ;;  %s428_s6 = smov [#allocation4]  }
   0x2   :  { %s14_s7 = sshll.u32 %s428_s6, 4  ;;  %s15_s7 = int_to_ptr.vmem [resolvable:$true] %s14_s7 }
   0x3   :  { %s392_s8 = scalar_lea.vmem %s15_s7, 256  ;;  %p397_p1 = scmp.lt.s32.totalorder %s15_s7, %s15_s7 }
   0x4   :  { %p393_p0 = scmp.ne.s32.totalorder %s15_s7, %s392_s8  ;;  %p398_p2 = scmp.lt.s32.totalorder %s392_s8, %s392_s8 }
   0x6   :  { %p399_p3 = por %p398_p2, %p397_p1 }
   0x8   :  { %p400_p4 = pnand %p399_p3, %p393_p0 }
   0xa   :  { %403 = shalt.err (!%p400_p4)
}
   0xb   :  { %17 = dma.hbm_to_vmem [thread:$0]  %s507_s0, 256, %s15_s7, [#allocation5]  }
   0xc   :  { %424 = dma.done.wait [#allocation5], 256  }
   0xd   :  { %425 = vsyncadd [#allocation5], 4294967040  ;;  %v36_v0 = vlaneseq  ;;  %v429_v1 = vmov 1983009808   ;;  %v27_v6 = vld [vmem:[#allocation4] sm:$0xff]  ;;  %v450_v7 = vld [vmem:[#allocation4 + $0x8] sm:$0xff] }
   0xe   :  { %v34_v2 = vunpack.c.l.s4 %v429_v1  ;;  %vm74_vm0 = vcmask 1041408   ;;  %v32_v8 = vcombine.high %v27_v6, %v27_v6  ;;  %v49_v10 = vcombine.high %v450_v7, %v450_v7  ;;  %s431_s0 = smov [#allocation7]  }
   0xf   :  { %v445_v3 = vshrl.u32 %v36_v0, 7  ;;  %v430_v12 = vmov 1966171168   ;;  %v192_v14 = vmul.f32 %v27_v6, %v27_v6  ;;  %s369_s11 = sshll.u32 %s431_s0, 4  ;;  %s370_s11 = int_to_ptr.vmem [resolvable:$true] %s369_s11 }
  0x10   :  { %v35_v4 = vunpack.c.0.s8 %v34_v2  ;;  %v457_v13 = vunpack.c.l.s4 %v430_v12  ;;  %s404_s12 = scalar_lea.vmem %s370_s11, 128  ;;  %p409_p6 = scmp.lt.s32.totalorder %s370_s11, %s370_s11 }
  0x11   :  { %v196_v21 = vcombine.high %v192_v14, %v192_v14  ;;  %p405_p5 = scmp.ne.s32.totalorder %s370_s11, %s404_s12  ;;  %p410_p7 = scmp.lt.s32.totalorder %s404_s12, %s404_s12 }
  0x12   :  { %v448_v5 = vsub.s32 %v35_v4, %v445_v3  ;;  %v145_v2 = vunpack.c.0.s8 %v457_v13 }
  0x13   :  { %p411_p8 = por %p410_p7, %p409_p6 }
  0x14   :  { %v39_v9 = vrot.slane %v27_v6, %v448_v5  ;;  %v56_v11 = vrot.slane %v450_v7, %v448_v5  ;;  %v46_v15 = vrot.slane %v32_v8, %v448_v5  ;;  %v63_v17 = vrot.slane %v49_v10, %v448_v5 }
  0x15   :  { %v464_v22 = vrot.slane %v192_v14, %v448_v5  ;;  %v210_v12 = vrot.slane %v196_v21, %v448_v5  ;;  %p412_p9 = pnand %p411_p8, %p405_p5 }
  0x16   :  { %v47_v16 = vcombine.high %v39_v9, %v39_v9  ;;  %v64_v18 = vcombine.high %v56_v11, %v56_v11  ;;  %v75_v19 = vsel %vm74_vm0, %v39_v9, 0.0  ;;  %v103_v20 = vsel %vm74_vm0, %v56_v11, 0.0 }
  0x17   :  { %v48_v23 = vcombine.high %v46_v15, %v46_v15  ;;  %v65_v24 = vcombine.high %v63_v17, %v63_v17  ;;  %v76_v25 = vrot.slane %v75_v19, 4  ;;  %v89_v28 = vsel %vm74_vm0, %v46_v15, 0.0 }
  0x18   :  { %v82_v26 = vsel %vm74_vm0, %v47_v16, 0.0  ;;  %v104_v29 = vrot.slane %v103_v20, 4  ;;  %v110_v30 = vsel %vm74_vm0, %v64_v18, 0.0  ;;  %v90_v32 = vrot.slane %v89_v28, 4 }
  0x19   :  { %v83_v27 = vrot.slane %v82_v26, 4  ;;  %v77_v31 = vadd.f32 %v76_v25, %v75_v19  ;;  %v96_v33 = vsel %vm74_vm0, %v48_v23, 0.0  ;;  %v111_v34 = vrot.slane %v110_v30, 4 }
  0x1a   :  { %v97_v36 = vrot.slane %v96_v33, 4  ;;  %v105_v37 = vadd.f32 %v104_v29, %v103_v20  ;;  %v117_v38 = vsel %vm74_vm0, %v63_v17, 0.0  ;;  %v91_v40 = vadd.f32 %v90_v32, %v89_v28 }
  0x1b   :  { %v84_v35 = vadd.f32 %v83_v27, %v82_v26  ;;  %v78_v39 = vrot.slane %v77_v31, 2  ;;  %v112_v41 = vadd.f32 %v111_v34, %v110_v30  ;;  %v118_v42 = vrot.slane %v117_v38, 4 }
  0x1c   :  { %v98_v44 = vadd.f32 %v97_v36, %v96_v33  ;;  %v106_v45 = vrot.slane %v105_v37, 2  ;;  %v124_v46 = vsel %vm74_vm0, %v65_v24, 0.0  ;;  %v92_v48 = vrot.slane %v91_v40, 2 }
  0x1d   :  { %v85_v43 = vrot.slane %v84_v35, 2  ;;  %v79_v47 = vadd.f32 %v78_v39, %v77_v31  ;;  %v113_v49 = vrot.slane %v112_v41, 2  ;;  %v119_v50 = vadd.f32 %v118_v42, %v117_v38 }
  0x1e   :  { %v99_v52 = vrot.slane %v98_v44, 2  ;;  %v107_v53 = vadd.f32 %v106_v45, %v105_v37  ;;  %v125_v54 = vrot.slane %v124_v46, 4  ;;  %v93_v56 = vadd.f32 %v92_v48, %v91_v40 }
  0x1f   :  { %v86_v51 = vadd.f32 %v85_v43, %v84_v35  ;;  %v80_v55 = vrot.slane %v79_v47, 1  ;;  %v114_v57 = vadd.f32 %v113_v49, %v112_v41  ;;  %v120_v58 = vrot.slane %v119_v50, 2 }
  0x20   :  { %v100_v60 = vadd.f32 %v99_v52, %v98_v44  ;;  %v108_v61 = vrot.slane %v107_v53, 1  ;;  %v126_v62 = vadd.f32 %v125_v54, %v124_v46  ;;  %v94_v63 = vrot.slane %v93_v56, 1 }
  0x21   :  { %v87_v59 = vrot.slane %v86_v51, 1  ;;  %v115_v0 = vrot.slane %v114_v57, 1  ;;  %v121_v1 = vadd.f32 %v120_v58, %v119_v50  ;;  %v81_v4 = vadd.f32 %v80_v55, %v79_v47 }
  0x22   :  { %v101_v8 = vrot.slane %v100_v60, 1  ;;  %v127_v9 = vrot.slane %v126_v62, 2  ;;  %v193_v11 = vmul.f32 %v450_v7, %v450_v7  ;;  %v109_v14 = vadd.f32 %v108_v61, %v107_v53 }
  0x23   :  { %v88_v6 = vadd.f32 %v87_v59, %v86_v51  ;;  %v122_v10 = vrot.slane %v121_v1, 1  ;;  %v116_v15 = vadd.f32 %v115_v0, %v114_v57  ;;  %v211_v17 = vcombine.high %v464_v22, %v464_v22 }
  0x24   :  { %v128_v16 = vadd.f32 %v127_v9, %v126_v62  ;;  %v95_v18 = vadd.f32 %v94_v63, %v93_v56  ;;  %v102_v19 = vadd.f32 %v101_v8, %v100_v60  ;;  %v212_v20 = vcombine.high %v210_v12, %v210_v12 }
  0x25   :  { %v139_v23 = vcombine.low %v81_v4, %v88_v6  ;;  %v479_v24 = vsub.s32 %v145_v2, %v445_v3  ;;  %v220_v25 = vrot.slane %v193_v11, %v448_v5  ;;  %v123_v26 = vadd.f32 %v122_v10, %v121_v1 }
  0x26   :  { %v129_v13 = vrot.slane %v128_v16, 1  ;;  %v238_v7 = vsel %vm74_vm0, %v464_v22, 0.0  ;;  %v245_v21 = vsel %vm74_vm0, %v211_v17, 0.0  ;;  %v141_v27 = vcombine.low %v109_v14, %v116_v15 }
  0x27   :  { %v213_v28 = vcombine.high %v193_v11, %v193_v11  ;;  %v228_v29 = vcombine.high %v220_v25, %v220_v25  ;;  %v239_v30 = vrot.slane %v238_v7, 4  ;;  %v140_v31 = vcombine.low %v95_v18, %v102_v19 }
  0x28   :  { %v246_v32 = vrot.slane %v245_v21, 4  ;;  %v252_v33 = vsel %vm74_vm0, %v210_v12, 0.0  ;;  %v259_v34 = vsel %vm74_vm0, %v212_v20, 0.0  ;;  %v130_v3 = vadd.f32 %v129_v13, %v128_v16 }
  0x29   :  { %v149_v35 = vrot.slane %v139_v23, %v479_v24  ;;  %v240_v36 = vadd.f32 %v239_v30, %v238_v7  ;;  %v253_v37 = vrot.slane %v252_v33, 4  ;;  %v260_v39 = vrot.slane %v259_v34, 4 }
  0x2a   :  { %v247_v38 = vadd.f32 %v246_v32, %v245_v21  ;;  %v266_v22 = vsel %vm74_vm0, %v220_v25, 0.0  ;;  %v273_v40 = vsel %vm74_vm0, %v228_v29, 0.0  ;;  %v163_v41 = vrot.slane %v141_v27, %v479_v24 }
  0x2b   :  { %v227_v42 = vrot.slane %v213_v28, %v448_v5  ;;  %v241_v43 = vrot.slane %v240_v36, 2  ;;  %v254_v44 = vadd.f32 %v253_v37, %v252_v33  ;;  %v261_v46 = vadd.f32 %v260_v39, %v259_v34 }
  0x2c   :  { %v248_v45 = vrot.slane %v247_v38, 2  ;;  %v267_v47 = vrot.slane %v266_v22, 4  ;;  %v274_v48 = vrot.slane %v273_v40, 4  ;;  %v142_v49 = vcombine.low %v123_v26, %v130_v3 }
  0x2d   :  { %v242_v50 = vadd.f32 %v241_v43, %v240_v36  ;;  %v255_v51 = vrot.slane %v254_v44, 2  ;;  %v280_v52 = vsel %vm74_vm0, %v227_v42, 0.0  ;;  %v262_v54 = vrot.slane %v261_v46, 2 }
  0x2e   :  { %v249_v53 = vadd.f32 %v248_v45, %v247_v38  ;;  %v268_v55 = vadd.f32 %v267_v47, %v266_v22  ;;  %v275_v56 = vadd.f32 %v274_v48, %v273_v40  ;;  %v229_v57 = vcombine.high %v227_v42, %v227_v42 }
  0x2f   :  { %v243_v58 = vrot.slane %v242_v50, 1  ;;  %v256_v59 = vadd.f32 %v255_v51, %v254_v44  ;;  %v281_v60 = vrot.slane %v280_v52, 4  ;;  %v263_v61 = vadd.f32 %v262_v54, %v261_v46 }
  0x30   :  { %v250_v5 = vrot.slane %v249_v53, 1  ;;  %v269_v62 = vrot.slane %v268_v55, 2  ;;  %v276_v63 = vrot.slane %v275_v56, 2  ;;  %v156_v0 = vrot.slane %v140_v31, %v479_v24 }
  0x31   :  { %v170_v1 = vrot.slane %v142_v49, %v479_v24  ;;  %v257_v2 = vrot.slane %v256_v59, 1  ;;  %v282_v4 = vadd.f32 %v281_v60, %v280_v52  ;;  %v244_v6 = vadd.f32 %v243_v58, %v242_v50 }
  0x32   :  { %v264_v8 = vrot.slane %v263_v61, 1  ;;  %v270_v9 = vadd.f32 %v269_v62, %v268_v55  ;;  %v277_v10 = vadd.f32 %v276_v63, %v275_v56  ;;  %v251_v11 = vadd.f32 %v250_v5, %v249_v53 }
  0x33   :  { %v258_v12 = vadd.f32 %v257_v2, %v256_v59  ;;  %v283_v14 = vrot.slane %v282_v4, 2  ;;  %v287_v15 = vsel %vm74_vm0, %v229_v57, 0.0  ;;  %v171_v13 = vcombine.low %v149_v35, %v156_v0 }
  0x34   :  { %v265_v16 = vadd.f32 %v264_v8, %v263_v61  ;;  %v271_v17 = vrot.slane %v270_v9, 1  ;;  %v278_v18 = vrot.slane %v277_v10, 1  ;;  %v288_v19 = vrot.slane %v287_v15, 4 }
  0x35   :  { %v284_v20 = vadd.f32 %v283_v14, %v282_v4  ;;  %v172_v23 = vcombine.low %v163_v41, %v170_v1  ;;  %v302_v7 = vcombine.low %v244_v6, %v251_v11  ;;  %v179_v30 = vrot.slane %v171_v13, %v479_v24 }
  0x36   :  { %v289_v25 = vadd.f32 %v288_v19, %v287_v15  ;;  %v272_v26 = vadd.f32 %v271_v17, %v270_v9  ;;  %v279_v21 = vadd.f32 %v278_v18, %v277_v10  ;;  %v303_v29 = vcombine.low %v258_v12, %v265_v16 }
  0x37   :  { %v285_v27 = vrot.slane %v284_v20, 1  ;;  %v186_v31 = vrot.slane %v172_v23, %v479_v24  ;;  %v312_v33 = vrot.slane %v302_v7, %v479_v24 }
  0x38   :  { %v290_v28 = vrot.slane %v289_v25, 2  ;;  %v304_v36 = vcombine.low %v272_v26, %v279_v21  ;;  %v319_v35 = vrot.slane %v303_v29, %v479_v24 }
  0x39   :  { %v286_v34 = vadd.f32 %v285_v27, %v284_v20  ;;  %v187_v37 = vcombine.low %v179_v30, %v186_v31 }
  0x3a   :  { %v291_v32 = vadd.f32 %v290_v28, %v289_v25  ;;  %v326_v22 = vrot.slane %v304_v36, %v479_v24  ;;  %v334_v40 = vcombine.low %v312_v33, %v319_v35 }
  0x3b   :  { %v359_v42 = vmul.f32 %v187_v37, %v187_v37 }
  0x3c   :  { %v292_v3 = vrot.slane %v291_v32, 1  ;;  %v342_v44 = vrot.slane %v334_v40, %v479_v24 }
  0x3d   :  { %v360_v46 = vmul.f32 0.5, %v359_v42 }
  0x3e   :  { %v293_v38 = vadd.f32 %v292_v3, %v291_v32 }
  0x40   :  { %v305_v39 = vcombine.low %v286_v34, %v293_v38 }
  0x42   :  { %v333_v41 = vrot.slane %v305_v39, %v479_v24 }
  0x44   :  { %v335_v43 = vcombine.low %v326_v22, %v333_v41 }
  0x46   :  { %v349_v45 = vrot.slane %v335_v43, %v479_v24 }
  0x48   :  { %v350_v47 = vcombine.low %v342_v44, %v349_v45 }
  0x4a   :  { %v361_v48 = vsub.f32 %v350_v47, %v360_v46 }
  0x4c   :  { %362 = vst [vmem:[#allocation7] sm:$0xff] %v361_v48 }
  0x4d   :  { %415 = shalt.err (!%p412_p9)
}
  0x4e   :  { %372 = dma.vmem_to_hbm [thread:$0]  %s370_s11, 128, %s508_s1, [#allocation6]  }
  0x4f   :  { %426 = dma.done.wait [#allocation6], 128  }
  0x50   :  { %427 = vsyncadd [#allocation6], 4294967168 }
  0x51   :  { %376 = vsyncpa [#allocation5], 1 }
  0x52   :  { %377 = vsyncpa [#allocation6], 1 }

</bundles_post_ra>
